<compile_context>
chip_gen: v7x
topology: tpu7x:2x2x1
jax: 0.10.0
libtpu: 0.0.40
codegen_flags: <defaults>
</compile_context>

<pallas_src>
import functools

import jax
import jax.numpy as jnp
from jax.experimental import pallas as pl
from jax.experimental.pallas import tpu as pltpu

EPS = 1e-8


def _round_up(x, m):
    return (x + m - 1) // m * m


def ff_model_kernel(
    obs_ref, acs_ref,           # (TB, ob_dim), (TB, ac_dim) raw inputs
    w0o_ref, w0a_ref, b0_ref,   # layer 0, normalization folded in (per part)
    w1_ref, b1_ref,             # layer 1
    wd_ref, bd_ref,             # delta head (normalized output)
    wn_ref, bn_ref,             # next-obs head (delta_std/mean folded in)
    next_ref, delta_ref,        # (TB, ob_dim) outputs
):
    obs = obs_ref[...]
    acs = acs_ref[...]

    # layer 0: (obs_norm|acs_norm) @ W0 + b0, folded into raw-input matmuls
    h = jnp.tanh(
        jnp.dot(obs, w0o_ref[...], preferred_element_type=jnp.float32)
        + jnp.dot(acs, w0a_ref[...], preferred_element_type=jnp.float32)
        + b0_ref[...]
    )
    # layer 1
    h = jnp.tanh(
        jnp.dot(h, w1_ref[...], preferred_element_type=jnp.float32) + b1_ref[...]
    )

    # normalized delta prediction (direct store, no slab/concat)
    delta_ref[...] = (
        jnp.dot(h, wd_ref[...], preferred_element_type=jnp.float32) + bd_ref[...]
    )
    # next_obs = obs + delta_n * delta_std + delta_mean  (scale/shift folded
    # into wn/bn by the wrapper)
    next_ref[...] = obs + (
        jnp.dot(h, wn_ref[...], preferred_element_type=jnp.float32) + bn_ref[...]
    )


def ff_model_forward(obs, acs, stats, params, *, block_rows=4096):
    """stats: dict of [1, D] arrays; params: dict of weight/bias arrays."""
    B, ob_dim = obs.shape
    _, ac_dim = acs.shape
    size = params["w1"].shape[0]

    obs = obs.astype(jnp.float32)
    acs = acs.astype(jnp.float32)

    # ---- wrapper-side prep: O(weights), done once per call --------------------
    inv_obs = 1.0 / (stats["obs_std"] + EPS)                        # (1, ob_dim)
    inv_acs = 1.0 / (stats["acs_std"] + EPS)                        # (1, ac_dim)
    # (x - mean)*inv @ W  ==  x @ (inv.T * W) + const
    w0o_f = params["w0o"] * inv_obs.T                               # (ob_dim, size)
    w0a_f = params["w0a"] * inv_acs.T                               # (ac_dim, size)
    b0_f = (
        params["b0"]
        - (stats["obs_mean"] * inv_obs) @ params["w0o"]
        - (stats["acs_mean"] * inv_acs) @ params["w0a"]
    )                                                               # (1, size)
    # delta head (normalized) and next-obs head (unnormalize folded in)
    wd = params["wout"]
    bd = params["bout"]
    wn = params["wout"] * stats["delta_std"]                        # (size, ob_dim)
    bn = params["bout"] * stats["delta_std"] + stats["delta_mean"]  # (1, ob_dim)

    # ---- batch tiling (no explicit padding: Pallas handles the ragged tail) ---
    tb = _round_up(min(block_rows, B), 8)
    grid = (pl.cdiv(B, tb),)

    def const_spec(shape):
        return pl.BlockSpec(shape, lambda i: (0, 0))

    flops_per_row = 2 * (ob_dim * size + ac_dim * size + size * size
                         + 2 * size * ob_dim)
    cost = pl.CostEstimate(
        flops=flops_per_row * B,
        transcendentals=2 * size * B,
        bytes_accessed=(ob_dim + ac_dim + 2 * ob_dim) * 4 * B,
    )

    next_obs, delta_norm = pl.pallas_call(
        ff_model_kernel,
        out_shape=(
            jax.ShapeDtypeStruct((B, ob_dim), jnp.float32),
            jax.ShapeDtypeStruct((B, ob_dim), jnp.float32),
        ),
        grid=grid,
        in_specs=[
            pl.BlockSpec((tb, ob_dim), lambda i: (i, 0)),   # streamed obs tiles
            pl.BlockSpec((tb, ac_dim), lambda i: (i, 0)),   # streamed acs tiles
            const_spec((ob_dim, size)),                     # w0o (folded)
            const_spec((ac_dim, size)),                     # w0a (folded)
            const_spec((1, size)),                          # b0 (folded)
            const_spec((size, size)),                       # w1
            const_spec((1, size)),                          # b1
            const_spec((size, ob_dim)),                     # wout (delta head)
            const_spec((1, ob_dim)),                        # bout
            const_spec((size, ob_dim)),                     # wout*delta_std
            const_spec((1, ob_dim)),                        # bout*delta_std+mean
        ],
        out_specs=(
            pl.BlockSpec((tb, ob_dim), lambda i: (i, 0)),
            pl.BlockSpec((tb, ob_dim), lambda i: (i, 0)),
        ),
        compiler_params=pltpu.CompilerParams(
            dimension_semantics=("parallel",),
            vmem_limit_bytes=32 * 1024 * 1024,
        ),
        cost_estimate=cost,
    )(
        obs, acs,
        w0o_f, w0a_f, b0_f,
        params["w1"], params["b1"],
        wd, bd,
        wn, bn,
    )

    return next_obs, delta_norm


def reference_forward(obs, acs, stats, params):
    obs_n = (obs - stats["obs_mean"]) / (stats["obs_std"] + EPS)
    acs_n = (acs - stats["acs_mean"]) / (stats["acs_std"] + EPS)
    x = jnp.concatenate([obs_n, acs_n], axis=1)
    w0 = jnp.concatenate([params["w0o"], params["w0a"]], axis=0)
    h = jnp.tanh(x @ w0 + params["b0"])
    h = jnp.tanh(h @ params["w1"] + params["b1"])
    delta_n = h @ params["wout"] + params["bout"]
    next_obs = obs + delta_n * stats["delta_std"] + stats["delta_mean"]
    return next_obs, delta_n


def _make_inputs(key, B, ob_dim, ac_dim, size):
    keys = jax.random.split(key, 16)
    obs = jax.random.normal(keys[0], (B, ob_dim), jnp.float32) * 2.0 + 1.0
    acs = jax.random.normal(keys[1], (B, ac_dim), jnp.float32)

    stats = {
        "obs_mean": jax.random.normal(keys[2], (1, ob_dim), jnp.float32) * 0.5,
        "obs_std": jnp.abs(jax.random.normal(keys[3], (1, ob_dim), jnp.float32)) + 0.5,
        "acs_mean": jax.random.normal(keys[4], (1, ac_dim), jnp.float32) * 0.5,
        "acs_std": jnp.abs(jax.random.normal(keys[5], (1, ac_dim), jnp.float32)) + 0.5,
        "delta_mean": jax.random.normal(keys[6], (1, ob_dim), jnp.float32) * 0.1,
        "delta_std": jnp.abs(jax.random.normal(keys[7], (1, ob_dim), jnp.float32)) + 0.1,
    }

    def init_linear(k, fan_in, fan_out):
        kw, kb = jax.random.split(k)
        w = jax.random.normal(kw, (fan_in, fan_out), jnp.float32) / jnp.sqrt(fan_in)
        b = jax.random.normal(kb, (1, fan_out), jnp.float32) * 0.01
        return w, b

    w0, b0 = init_linear(keys[8], ob_dim + ac_dim, size)
    w1, b1 = init_linear(keys[9], size, size)
    wout, bout = init_linear(keys[10], size, ob_dim)

    params = {
        "w0o": w0[:ob_dim],   # rows multiplying obs features
        "w0a": w0[ob_dim:],   # rows multiplying acs features
        "b0": b0,
        "w1": w1, "b1": b1,
        "wout": wout, "bout": bout,
    }
    return obs, acs, stats, params


if __name__ == "__main__":
    # Small shapes consistent with the module: ob_dim=8, ac_dim=4,
    # n_layers=2 hidden layers of size=32.
    ob_dim, ac_dim, size = 8, 4, 32
    key = jax.random.PRNGKey(0)
    k1, k2 = jax.random.split(key)

    # Case 1: tiny batch (single grid step, tile clamped to batch size).
    obs, acs, stats, params = _make_inputs(k1, 8, ob_dim, ac_dim, size)
    fwd = jax.jit(functools.partial(ff_model_forward, block_rows=4096))
    next_obs, delta_norm = fwd(obs, acs, stats, params)
    jax.block_until_ready((next_obs, delta_norm))
    ref_next_obs, ref_delta = reference_forward(obs, acs, stats, params)
    assert jnp.allclose(next_obs, ref_next_obs, atol=1e-4, rtol=1e-4)
    assert jnp.allclose(delta_norm, ref_delta, atol=1e-4, rtol=1e-4)

    # Case 2: ragged batch with multi-step grid and a partial last block
    # (exercises pipelining + masked OOB writes, no explicit padding).
    obs2, acs2, stats2, params2 = _make_inputs(k2, 200, ob_dim, ac_dim, size)
    fwd_small_tile = jax.jit(functools.partial(ff_model_forward, block_rows=64))
    next_obs2, delta_norm2 = fwd_small_tile(obs2, acs2, stats2, params2)
    jax.block_until_ready((next_obs2, delta_norm2))
    ref_next_obs2, ref_delta2 = reference_forward(obs2, acs2, stats2, params2)
    assert jnp.allclose(next_obs2, ref_next_obs2, atol=1e-4, rtol=1e-4)
    assert jnp.allclose(delta_norm2, ref_delta2, atol=1e-4, rtol=1e-4)

    print("KERNEL_OK")
</pallas_src>

<mosaic_0001>
module attributes {stable_mosaic.version = 11 : i64} {
  func.func @ff_model_kernel(%arg0: i32, %arg1: memref<8x8xf32, #tpu.memory_space<vmem>>, %arg2: memref<8x4xf32, #tpu.memory_space<vmem>>, %arg3: memref<8x32xf32, #tpu.memory_space<vmem>>, %arg4: memref<4x32xf32, #tpu.memory_space<vmem>>, %arg5: memref<1x32xf32, #tpu.memory_space<vmem>>, %arg6: memref<32x32xf32, #tpu.memory_space<vmem>>, %arg7: memref<1x32xf32, #tpu.memory_space<vmem>>, %arg8: memref<32x8xf32, #tpu.memory_space<vmem>>, %arg9: memref<1x8xf32, #tpu.memory_space<vmem>>, %arg10: memref<32x8xf32, #tpu.memory_space<vmem>>, %arg11: memref<1x8xf32, #tpu.memory_space<vmem>>, %arg12: memref<8x8xf32, #tpu.memory_space<vmem>>, %arg13: memref<8x8xf32, #tpu.memory_space<vmem>>) attributes {dimension_semantics = [#tpu.dimension_semantics<parallel>], iteration_bounds = array<i64: 1>, scalar_prefetch = 0 : i64, scratch_operands = 0 : i64, tpu.core_type = #tpu.core_type<tc>, window_params = [{transform_indices = @transform_0, window_bounds = array<i64: 8, 8>}, {transform_indices = @transform_1, window_bounds = array<i64: 8, 4>}, {pipeline_mode = #tpu.pipeline_mode<synchronous>, transform_indices = @transform_2, window_bounds = array<i64: 8, 32>}, {pipeline_mode = #tpu.pipeline_mode<synchronous>, transform_indices = @transform_3, window_bounds = array<i64: 4, 32>}, {pipeline_mode = #tpu.pipeline_mode<synchronous>, transform_indices = @transform_4, window_bounds = array<i64: 1, 32>}, {pipeline_mode = #tpu.pipeline_mode<synchronous>, transform_indices = @transform_5, window_bounds = array<i64: 32, 32>}, {pipeline_mode = #tpu.pipeline_mode<synchronous>, transform_indices = @transform_6, window_bounds = array<i64: 1, 32>}, {pipeline_mode = #tpu.pipeline_mode<synchronous>, transform_indices = @transform_7, window_bounds = array<i64: 32, 8>}, {pipeline_mode = #tpu.pipeline_mode<synchronous>, transform_indices = @transform_8, window_bounds = array<i64: 1, 8>}, {pipeline_mode = #tpu.pipeline_mode<synchronous>, transform_indices = @transform_9, window_bounds = array<i64: 32, 8>}, {pipeline_mode = #tpu.pipeline_mode<synchronous>, transform_indices = @transform_10, window_bounds = array<i64: 1, 8>}, {transform_indices = @transform_11, window_bounds = array<i64: 8, 8>}, {transform_indices = @transform_12, window_bounds = array<i64: 8, 8>}]} {
    %c0 = arith.constant 0 : index
    %c0_0 = arith.constant 0 : index
    %0 = vector.load %arg1[%c0, %c0_0] : memref<8x8xf32, #tpu.memory_space<vmem>>, vector<8x8xf32>
    %c0_1 = arith.constant 0 : index
    %c0_2 = arith.constant 0 : index
    %1 = vector.load %arg2[%c0_1, %c0_2] : memref<8x4xf32, #tpu.memory_space<vmem>>, vector<8x4xf32>
    %c0_3 = arith.constant 0 : index
    %c0_4 = arith.constant 0 : index
    %2 = vector.load %arg3[%c0_3, %c0_4] : memref<8x32xf32, #tpu.memory_space<vmem>>, vector<8x32xf32>
    %cst = arith.constant dense<0.000000e+00> : vector<8x32xf32>
    %3 = tpu.matmul %0, %2, %cst {dimension_numbers = #tpu.dot_dimension_numbers<[1], [0], [0], [1], [0, 0, 1, 1], [], []>} : vector<8x8xf32>, vector<8x32xf32>, vector<8x32xf32> -> vector<8x32xf32>
    %c0_5 = arith.constant 0 : index
    %c0_6 = arith.constant 0 : index
    %4 = vector.load %arg4[%c0_5, %c0_6] : memref<4x32xf32, #tpu.memory_space<vmem>>, vector<4x32xf32>
    %cst_7 = arith.constant dense<0.000000e+00> : vector<8x32xf32>
    %5 = tpu.matmul %1, %4, %cst_7 {dimension_numbers = #tpu.dot_dimension_numbers<[1], [0], [0], [1], [0, 0, 1, 1], [], []>} : vector<8x4xf32>, vector<4x32xf32>, vector<8x32xf32> -> vector<8x32xf32>
    %6 = arith.addf %3, %5 : vector<8x32xf32>
    %c0_8 = arith.constant 0 : index
    %c0_9 = arith.constant 0 : index
    %7 = vector.load %arg5[%c0_8, %c0_9] : memref<1x32xf32, #tpu.memory_space<vmem>>, vector<1x32xf32>
    %8 = vector.broadcast %7 : vector<1x32xf32> to vector<8x32xf32>
    %9 = arith.addf %6, %8 : vector<8x32xf32>
    %10 = math.tanh %9 : vector<8x32xf32>
    %c0_10 = arith.constant 0 : index
    %c0_11 = arith.constant 0 : index
    %11 = vector.load %arg6[%c0_10, %c0_11] : memref<32x32xf32, #tpu.memory_space<vmem>>, vector<32x32xf32>
    %cst_12 = arith.constant dense<0.000000e+00> : vector<8x32xf32>
    %12 = tpu.matmul %10, %11, %cst_12 {dimension_numbers = #tpu.dot_dimension_numbers<[1], [0], [0], [1], [0, 0, 1, 1], [], []>} : vector<8x32xf32>, vector<32x32xf32>, vector<8x32xf32> -> vector<8x32xf32>
    %c0_13 = arith.constant 0 : index
    %c0_14 = arith.constant 0 : index
    %13 = vector.load %arg7[%c0_13, %c0_14] : memref<1x32xf32, #tpu.memory_space<vmem>>, vector<1x32xf32>
    %14 = vector.broadcast %13 : vector<1x32xf32> to vector<8x32xf32>
    %15 = arith.addf %12, %14 : vector<8x32xf32>
    %16 = math.tanh %15 : vector<8x32xf32>
    %c0_15 = arith.constant 0 : index
    %c0_16 = arith.constant 0 : index
    %17 = vector.load %arg8[%c0_15, %c0_16] : memref<32x8xf32, #tpu.memory_space<vmem>>, vector<32x8xf32>
    %cst_17 = arith.constant dense<0.000000e+00> : vector<8x8xf32>
    %18 = tpu.matmul %16, %17, %cst_17 {dimension_numbers = #tpu.dot_dimension_numbers<[1], [0], [0], [1], [0, 0, 1, 1], [], []>} : vector<8x32xf32>, vector<32x8xf32>, vector<8x8xf32> -> vector<8x8xf32>
    %c0_18 = arith.constant 0 : index
    %c0_19 = arith.constant 0 : index
    %19 = vector.load %arg9[%c0_18, %c0_19] : memref<1x8xf32, #tpu.memory_space<vmem>>, vector<1x8xf32>
    %20 = vector.broadcast %19 : vector<1x8xf32> to vector<8x8xf32>
    %21 = arith.addf %18, %20 : vector<8x8xf32>
    %c0_20 = arith.constant 0 : index
    %c0_21 = arith.constant 0 : index
    %22 = vector.load %arg13[%c0_20, %c0_21] : memref<8x8xf32, #tpu.memory_space<vmem>>, vector<8x8xf32>
    tpu.vector_store %arg13[%c0_20, %c0_21], %21 {strides = array<i32>} : memref<8x8xf32, #tpu.memory_space<vmem>>, vector<8x8xf32>,
    %c0_22 = arith.constant 0 : index
    %c0_23 = arith.constant 0 : index
    %23 = vector.load %arg10[%c0_22, %c0_23] : memref<32x8xf32, #tpu.memory_space<vmem>>, vector<32x8xf32>
    %cst_24 = arith.constant dense<0.000000e+00> : vector<8x8xf32>
    %24 = tpu.matmul %16, %23, %cst_24 {dimension_numbers = #tpu.dot_dimension_numbers<[1], [0], [0], [1], [0, 0, 1, 1], [], []>} : vector<8x32xf32>, vector<32x8xf32>, vector<8x8xf32> -> vector<8x8xf32>
    %c0_25 = arith.constant 0 : index
    %c0_26 = arith.constant 0 : index
    %25 = vector.load %arg11[%c0_25, %c0_26] : memref<1x8xf32, #tpu.memory_space<vmem>>, vector<1x8xf32>
    %26 = vector.broadcast %25 : vector<1x8xf32> to vector<8x8xf32>
    %27 = arith.addf %24, %26 : vector<8x8xf32>
    %28 = arith.addf %0, %27 : vector<8x8xf32>
    %c0_27 = arith.constant 0 : index
    %c0_28 = arith.constant 0 : index
    %29 = vector.load %arg12[%c0_27, %c0_28] : memref<8x8xf32, #tpu.memory_space<vmem>>, vector<8x8xf32>
    tpu.vector_store %arg12[%c0_27, %c0_28], %28 {strides = array<i32>} : memref<8x8xf32, #tpu.memory_space<vmem>>, vector<8x8xf32>,
    return
  }
  func.func @transform_0(%arg0: i32) -> (i32, i32) {
    %c0_i32 = arith.constant 0 : i32
    %c0_i32_0 = arith.constant 0 : i32
    return %arg0, %c0_i32 : i32, i32
  }
  func.func @transform_1(%arg0: i32) -> (i32, i32) {
    %c0_i32 = arith.constant 0 : i32
    %c0_i32_0 = arith.constant 0 : i32
    return %arg0, %c0_i32 : i32, i32
  }
  func.func @transform_2(%arg0: i32) -> (i32, i32) {
    %c0_i32 = arith.constant 0 : i32
    %c0_i32_0 = arith.constant 0 : i32
    %c0_i32_1 = arith.constant 0 : i32
    return %c0_i32, %c0_i32_0 : i32, i32
  }
  func.func @transform_3(%arg0: i32) -> (i32, i32) {
    %c0_i32 = arith.constant 0 : i32
    %c0_i32_0 = arith.constant 0 : i32
    %c0_i32_1 = arith.constant 0 : i32
    return %c0_i32, %c0_i32_0 : i32, i32
  }
  func.func @transform_4(%arg0: i32) -> (i32, i32) {
    %c0_i32 = arith.constant 0 : i32
    %c0_i32_0 = arith.constant 0 : i32
    %c0_i32_1 = arith.constant 0 : i32
    return %c0_i32, %c0_i32_0 : i32, i32
  }
  func.func @transform_5(%arg0: i32) -> (i32, i32) {
    %c0_i32 = arith.constant 0 : i32
    %c0_i32_0 = arith.constant 0 : i32
    %c0_i32_1 = arith.constant 0 : i32
    return %c0_i32, %c0_i32_0 : i32, i32
  }
  func.func @transform_6(%arg0: i32) -> (i32, i32) {
    %c0_i32 = arith.constant 0 : i32
    %c0_i32_0 = arith.constant 0 : i32
    %c0_i32_1 = arith.constant 0 : i32
    return %c0_i32, %c0_i32_0 : i32, i32
  }
  func.func @transform_7(%arg0: i32) -> (i32, i32) {
    %c0_i32 = arith.constant 0 : i32
    %c0_i32_0 = arith.constant 0 : i32
    %c0_i32_1 = arith.constant 0 : i32
    return %c0_i32, %c0_i32_0 : i32, i32
  }
  func.func @transform_8(%arg0: i32) -> (i32, i32) {
    %c0_i32 = arith.constant 0 : i32
    %c0_i32_0 = arith.constant 0 : i32
    %c0_i32_1 = arith.constant 0 : i32
    return %c0_i32, %c0_i32_0 : i32, i32
  }
  func.func @transform_9(%arg0: i32) -> (i32, i32) {
    %c0_i32 = arith.constant 0 : i32
    %c0_i32_0 = arith.constant 0 : i32
    %c0_i32_1 = arith.constant 0 : i32
    return %c0_i32, %c0_i32_0 : i32, i32
  }
  func.func @transform_10(%arg0: i32) -> (i32, i32) {
    %c0_i32 = arith.constant 0 : i32
    %c0_i32_0 = arith.constant 0 : i32
    %c0_i32_1 = arith.constant 0 : i32
    return %c0_i32, %c0_i32_0 : i32, i32
  }
  func.func @transform_11(%arg0: i32) -> (i32, i32) {
    %c0_i32 = arith.constant 0 : i32
    %c0_i32_0 = arith.constant 0 : i32
    return %arg0, %c0_i32 : i32, i32
  }
  func.func @transform_12(%arg0: i32) -> (i32, i32) {
    %c0_i32 = arith.constant 0 : i32
    %c0_i32_0 = arith.constant 0 : i32
    return %arg0, %c0_i32 : i32, i32
  }
}

</mosaic_0001>

<bundles_post_ra>
// kernel: ff_model_forward.1
= control target key start
LH: loop header
LB: loop body
LE: loop exit
PB: predicated region body
PF: predicated region fallthrough
CT: control target
= control target key end

     0   :  { %18 = vsyncpa [#allocation3], 0  ;;  %vm50_vm0 = vcmask 1043456   ;;  %v636_v2 = vmov 0.0   ;;  %vm637_vm1 = vmmov 0   ;;  %vm46_vm2 = vcmask 31744   ;;  %s805_s0 = inlined_call_operand.vmem [shape: f32[8,8], index: 0, kind: input, shape index: {}]   ;;  %s806_s1 = inlined_call_operand.vmem [shape: f32[8,4], index: 1, kind: input, shape index: {}]   ;;  %s807_s2 = inlined_call_operand.vmem [shape: f32[8,32], index: 2, kind: input, shape index: {}]   ;;  %s808_s3 = inlined_call_operand.vmem [shape: f32[4,32], index: 3, kind: input, shape index: {}]   ;;  %s809_s4 = inlined_call_operand.vmem [shape: f32[1,32], index: 4, kind: input, shape index: {}]   ;;  %s810_s5 = inlined_call_operand.vmem [shape: f32[32,32], index: 5, kind: input, shape index: {}]   ;;  %s811_s6 = inlined_call_operand.vmem [shape: f32[1,32], index: 6, kind: input, shape index: {}]   ;;  %s812_s7 = inlined_call_operand.vmem [shape: f32[32,8], index: 7, kind: input, shape index: {}]   ;;  %s813_s8 = inlined_call_operand.vmem [shape: f32[1,8], index: 8, kind: input, shape index: {}]   ;;  %s814_s9 = inlined_call_operand.vmem [shape: f32[32,8], index: 9, kind: input, shape index: {}]   ;;  %s815_s10 = inlined_call_operand.vmem [shape: f32[1,8], index: 10, kind: input, shape index: {}]   ;;  %s816_s11 = inlined_call_operand.hbm [shape: f32[8,8], index: 11, kind: output, shape index: {0}]   ;;  %s817_s12 = inlined_call_operand.hbm [shape: f32[8,8], index: 12, kind: output, shape index: {1}]  }
   0x1   :  { %v45_v0 = vld [vmem:[%s808_s3] sm:$0xf]  ;;  %518 = vmatprep.subr.mxu1 %v636_v2  ;;  %520 = vmatprep.mubr.msk.f32.mxu1 %vm637_vm1, %v636_v2 }
   0x2   :  { %v43_v1 = vld [vmem:[%s806_s1] sm:$0xff] }
   0x3   :  { %v44_v3 = vld [vmem:[%s807_s2] sm:$0xff] }
   0x4   :  { %19 = vsyncpa [#allocation5], 0  ;;  %519 = vmatpush3.msk.msra.mxu1 %vm50_vm0, %v45_v0  ;;  %536 = vmatprep.mubr.msk.f32.mxu0 %vm637_vm1, %v636_v2  ;;  %v721_v4 = vld [vmem:[%s805_s0] sm:$0xff]  ;;  %vm124_vm3 = vcmask 64512   ;;  %v208_v6 = vld [vmem:[%s810_s5 + $0x8] sm:$0xff]  ;;  %v638_v8 = vmov 0.0|0.0  }
   0x5   :  { %521 = vmatmul.mubr.msk.f32.vlgmr.msra.gmra.mrb[0].mxu1 %vm46_vm2, %v43_v1  ;;  %523 = vmatprep.subr.mxu1 %v636_v2  ;;  %v207_v5 = vld [vmem:[%s810_s5] sm:$0xff]  ;;  %v209_v7 = vld [vmem:[%s810_s5 + $0x10] sm:$0xff]  ;;  %v210_v10 = vld [vmem:[%s810_s5 + $0x18] sm:$0xff]  ;;  %vm218_vm4 = vcmask 261120   ;;  %s639_s0 = smov [#allocation4]  }
   0x6   :  { %524 = vmatpush3.msra.mxu1 %v44_v3  ;;  %525 = vmatprep.mubr.msk.f32.mxu1 %vm637_vm1, %v636_v2  ;;  %v562_v9 = vpack.c.bf16 %v208_v6, %v207_v5  ;;  %v565_v11 = vpack.c.bf16 %v210_v10, %v209_v7  ;;  %v492_v15 = vld [vmem:[%s809_s4] ss:$0 sm:$0xff]  ;;  %v294_v21 = vld [vmem:[%s812_s7 + $0x8] sm:$0xff]  ;;  %v295_v25 = vld [vmem:[%s812_s7 + $0x10] sm:$0xff]  ;;  %s477_s14 = sshll.u32 %s639_s0, 4  ;;  %s478_s14 = int_to_ptr.vmem [resolvable:$true] %s477_s14 }
   0x7   :  { %561 = vmatprep.subr.bf16.mxu0 %v638_v8  ;;  %567 = vmatprep.subr.bf16.mxu1 %v638_v8  ;;  %v293_v20 = vld [vmem:[%s812_s7] sm:$0xff]  ;;  %v379_v24 = vld [vmem:[%s814_s9 + $0x8] sm:$0xff]  ;;  %v296_v26 = vld [vmem:[%s812_s7 + $0x18] sm:$0xff]  ;;  %p593_p1 = scmp.lt.s32.totalorder %s478_s14, %s478_s14 }
   0x8   :  { %563 = vmatpush3.bf16.msra.mxu0 %v562_v9  ;;  %v378_v22 = vld [vmem:[%s814_s9] sm:$0xff]  ;;  %v568_v23 = vpack.c.bf16 %v294_v21, %v293_v20  ;;  %v380_v28 = vld [vmem:[%s814_s9 + $0x10] sm:$0xff]  ;;  %v381_v29 = vld [vmem:[%s814_s9 + $0x18] sm:$0xff]  ;;  %v571_v30 = vpack.c.bf16 %v296_v26, %v295_v25 }
   0x9   :  { %526 = vmatmul.mubr.msk.f32.vlgmr.msra.gmra.mrb[2].mxu1 %vm124_vm3, %v721_v4  ;;  %564 = vmatprep.subr.bf16.mxu0 %v638_v8  ;;  %v574_v27 = vpack.c.bf16 %v379_v24, %v378_v22  ;;  %v577_v31 = vpack.c.bf16 %v381_v29, %v380_v28  ;;  %v493_v32 = vld [vmem:[%s811_s6] ss:$0 sm:$0xff]  ;;  %s640_s6 = smov [#allocation2]  }
   0xa   :  { %547 = vmatprep.mubr.msk.f32.mxu1 %vm637_vm1, %v636_v2  ;;  %569 = vmatpush3.bf16.msra.mxu1 %v568_v23  ;;  %v495_v37 = vld [vmem:[%s813_s8] ss:$0 sm:$0xff]  ;;  %s467_s15 = sshll.u32 %s640_s6, 4  ;;  %s588_s8 = scalar_lea.vmem %s478_s14, 128  ;;  %s468_s15 = int_to_ptr.vmem [resolvable:$true] %s467_s15 }
   0xb   :  { %570 = vmatprep.subr.bf16.mxu1 %v638_v8  ;;  %v497_v38 = vld [vmem:[%s815_s10] ss:$0 sm:$0xff]  ;;  %p589_p0 = scmp.ne.s32.totalorder %s478_s14, %s588_s8  ;;  %p594_p2 = scmp.lt.s32.totalorder %s588_s8, %s588_s8 }
   0xc   :  { %566 = vmatpush3.bf16.msra.mxu0 %v565_v11 }
   0xd   :  { %573 = vmatprep.subr.bf16.mxu0 %v638_v8  ;;  %p595_p3 = por %p594_p2, %p593_p1 }
   0xe   :  { %572 = vmatpush3.bf16.msra.mxu1 %v571_v30 }
   0xf   :  { %p596_p4 = pnand %p595_p3, %p589_p0 }
  0xd8   :  { %v120_v12 = vpop.f32.mrb[0].mxu1 }
  0xd9   :  { %v522_v13 = vpop.f32.mrb[1].mxu1 }
  0xdc   :  { %v194_v14 = vpop.f32.mrb[2].mxu1 }
  0xdd   :  { %v195_v16 = vadd.f32 %v194_v14, %v120_v12  ;;  %v527_v17 = vpop.f32.mrb[3].mxu1 }
  0xdf   :  { %v205_v18 = vadd.f32 %v492_v15, %v195_v16 }
  0xe1   :  { %584 = vtanh.f32 %v205_v18 }
  0xeb   :  { %v585_v19 = vpop.eup %584 }
  0xec   :  { %537 = vmatmul.mubr.msk.f32.vlgmr.msra.gmra.mrb[0].mxu0 %vm218_vm4, %v585_v19 }
  0xed   :  { %558 = vmatprep.mubr.msk.f32.mxu0 %vm637_vm1, %v636_v2  ;;  %575 = vmatpush3.bf16.msra.mxu0 %v574_v27 }
  0xee   :  { %576 = vmatprep.subr.bf16.mxu0 %v638_v8 }
  0xf1   :  { %578 = vmatpush3.bf16.msra.mxu0 %v577_v31 }
 0x1bf   :  { %v288_v33 = vpop.f32.mrb[0].mxu0 }
 0x1c0   :  { %v289_v34 = vadd.f32 %v493_v32, %v288_v33  ;;  %v538_v35 = vpop.f32.mrb[1].mxu0 }
 0x1c2   :  { %586 = vtanh.f32 %v289_v34 }
 0x1cc   :  { %v587_v36 = vpop.eup %586 }
 0x1cd   :  { %548 = vmatmul.mubr.msk.f32.vlgmr.msra.gmra.mrb[4].mxu1 %vm218_vm4, %v587_v36  ;;  %559 = vmatmul.mubr.msk.f32.vlgmr.msra.gmra.mrb[2].mxu0 %vm218_vm4, %v587_v36 }
 0x2a0   :  { %v373_v39 = vpop.f32.mrb[4].mxu1  ;;  %v455_v40 = vpop.f32.mrb[2].mxu0 }
 0x2a1   :  { %v374_v41 = vadd.f32 %v495_v37, %v373_v39  ;;  %v456_v42 = vadd.f32 %v497_v38, %v455_v40  ;;  %v549_v43 = vpop.f32.mrb[5].mxu1  ;;  %v560_v44 = vpop.f32.mrb[3].mxu0 }
 0x2a3   :  { %377 = vst.msk [vmem:[#allocation4] sm:$0xff] %vm124_vm3, %v374_v41  ;;  %v459_v45 = vadd.f32 %v456_v42, %v721_v4 }
 0x2a4   :  { %599 = shalt.err (!%p596_p4)
}
 0x2a5   :  { %s600_s5 = scalar_lea.hbm %s817_s12, 128 }
 0x2a6   :  { %p601_p5 = scmp.ne.s32.totalorder %s817_s12, %s600_s5  ;;  %p604_p6 = scmp.lt.u32.totalorder %s600_s5, %s817_s12 }
 0x2a8   :  { %p606_p7 = pnand %p604_p6, %p601_p5 }
 0x2aa   :  { %609 = shalt.err (!%p606_p7)
}
 0x2ab   :  { %480 = dma.vmem_to_hbm [thread:$0]  %s478_s14, 128, %s817_s12, [#allocation5]   ;;  %460 = vst.msk [vmem:[#allocation2] sm:$0xff] %vm124_vm3, %v459_v45 }
 0x2ac   :  { %s610_s22 = scalar_lea.vmem %s468_s15, 128  ;;  %p615_p9 = scmp.lt.s32.totalorder %s468_s15, %s468_s15 }
 0x2ad   :  { %p611_p8 = scmp.ne.s32.totalorder %s468_s15, %s610_s22  ;;  %p616_p10 = scmp.lt.s32.totalorder %s610_s22, %s610_s22 }
 0x2af   :  { %p617_p11 = por %p616_p10, %p615_p9 }
 0x2b1   :  { %p618_p12 = pnand %p617_p11, %p611_p8 }
 0x2b3   :  { %621 = shalt.err (!%p618_p12)
}
 0x2b4   :  { %s622_s25 = scalar_lea.hbm %s816_s11, 128 }
 0x2b5   :  { %p623_p13 = scmp.ne.s32.totalorder %s816_s11, %s622_s25  ;;  %p626_p0 = scmp.lt.u32.totalorder %s622_s25, %s816_s11 }
 0x2b7   :  { %p628_p1 = pnand %p626_p0, %p623_p13 }
 0x2b9   :  { %631 = shalt.err (!%p628_p1)
}
 0x2ba   :  { %470 = dma.vmem_to_hbm [thread:$0]  %s468_s15, 128, %s816_s11, [#allocation3]  }
 0x2bb   :  { %632 = dma.done.wait [#allocation3], 128  }
 0x2bc   :  { %633 = vsyncadd [#allocation3], 4294967168 }
 0x2bd   :  { %634 = dma.done.wait [#allocation5], 128  }
 0x2be   :  { %635 = vsyncadd [#allocation5], 4294967168 }
 0x2bf   :  { %487 = vsyncpa [#allocation3], 1 }
 0x2c0   :  { %488 = vsyncpa [#allocation5], 1 }

</bundles_post_ra>
